<compile_context>
chip_gen: v5e
topology: v5e:2x2
jax: 0.10.0
libtpu: 0.0.40
codegen_flags: <defaults>
</compile_context>

<pallas_src>
import functools

import jax
import jax.numpy as jnp
from jax.experimental import pallas as pl
from jax.experimental.pallas import tpu as pltpu


def _linear_be_kernel(x_ref, r_ref, w_ref, s_ref, b_ref, o_ref, *, precision):
    # x_ref: (BM, k, dim_in)   r_ref: (k, dim_in)   w_ref: (dim_in, bn)
    # s_ref, b_ref: (k, bn)    o_ref: (BM, k, bn)
    bm, k, d_in = x_ref.shape
    d_out = o_ref.shape[-1]

    # Pre-scale on the VPU; (k, dim_in) broadcasts over the leading BM dim.
    xr = x_ref[...] * r_ref[...]
    # Fold (BM, k) into one large M dimension for a single MXU dot.
    acc = jnp.dot(
        xr.reshape(bm * k, d_in),
        w_ref[...],
        preferred_element_type=jnp.float32,
        precision=precision,
    )
    acc = acc.reshape(bm, k, d_out)
    # Epilogue on the VPU; S/B broadcast over BM.
    o_ref[...] = (acc * s_ref[...] + b_ref[...]).astype(o_ref.dtype)


def linear_be(x, R, W, S, B, *,
              target_block_bytes=2 << 20,
              vmem_budget_bytes=48 << 20,
              precision=jax.lax.Precision.HIGHEST):
    """Computes ((x * R) @ W) * S + B with x: (batch, k, dim_in)."""
    batch, k, dim_in = x.shape
    dim_out = W.shape[1]
    assert R.shape == (k, dim_in)
    assert W.shape == (dim_in, dim_out)
    assert S.shape == (k, dim_out) and B.shape == (k, dim_out)

    x_itemsize = jnp.dtype(x.dtype).itemsize
    p_itemsize = jnp.dtype(W.dtype).itemsize

    # ---- N (dim_out) tiling: keep W resident unless it is genuinely large. --
    w_bytes = dim_in * dim_out * p_itemsize
    if w_bytes <= (8 << 20) or dim_out <= 512:
        block_n = dim_out            # full width -> W/S/B stay VMEM-resident
    else:
        block_n = 512                # multiple of 128; W re-streamed per tile
    n_n = pl.cdiv(dim_out, block_n)

    # ---- M (batch) tiling sized by bytes of X + out per step. --------------
    bytes_per_batch_row = k * (dim_in + block_n) * x_itemsize
    BM = max(1, int(target_block_bytes) // max(bytes_per_batch_row, 1))
    BM = min(BM, batch)
    if batch >= 2:
        # At least 2 grid steps so the "parallel" axis can use both v7x cores.
        BM = min(BM, pl.cdiv(batch, 2))

    # VMEM cap (invariants budgeted at 2x in case single-buffering is
    # unavailable; X/out blocks are double-buffered by the pipeline).
    inv_bytes = (k * dim_in + 2 * k * block_n + dim_in * block_n) * p_itemsize
    per_row_db = 2 * bytes_per_batch_row
    avail = max(vmem_budget_bytes - 2 * inv_bytes, per_row_db)
    BM = max(1, min(BM, avail // per_row_db))
    n_m = pl.cdiv(batch, BM)

    x_block_bytes = BM * k * dim_in * x_itemsize
    o_block_bytes = BM * k * block_n * x_itemsize
    vmem_needed = 2 * (x_block_bytes + o_block_bytes) + 2 * inv_bytes
    vmem_limit = int(min(max(2 * vmem_needed, 8 << 20), 48 << 20))

    kernel = functools.partial(_linear_be_kernel, precision=precision)

    def build(inv_mode):
        def spec(shape, imap, mode=None):
            if mode is None:
                return pl.BlockSpec(shape, imap)
            return pl.BlockSpec(shape, imap, pipeline_mode=mode)

        # R is grid-invariant always; W/S/B only when dim_out is untiled.
        wsb_mode = inv_mode if n_n == 1 else None
        return pl.pallas_call(
            kernel,
            out_shape=jax.ShapeDtypeStruct((batch, k, dim_out), x.dtype),
            grid_spec=pltpu.PrefetchScalarGridSpec(
                num_scalar_prefetch=0,
                grid=(n_m, n_n),
                in_specs=[
                    spec((BM, k, dim_in), lambda i, j: (i, 0, 0)),          # X
                    spec((k, dim_in), lambda i, j: (0, 0), inv_mode),       # R
                    spec((dim_in, block_n), lambda i, j: (0, j), wsb_mode), # W
                    spec((k, block_n), lambda i, j: (0, j), wsb_mode),      # S
                    spec((k, block_n), lambda i, j: (0, j), wsb_mode),      # B
                ],
                out_specs=pl.BlockSpec((BM, k, block_n),
                                       lambda i, j: (i, 0, j)),
            ),
            compiler_params=pltpu.CompilerParams(
                dimension_semantics=("parallel", "parallel"),
                vmem_limit_bytes=vmem_limit,
            ),
        )

    try:
        # Single-buffer the grid-invariant operands (halves their VMEM).
        return build(pl.Buffered(1))(x, R, W, S, B)
    except Exception:
        # pipeline_mode not supported by this JAX build -> default buffering.
        return build(None)(x, R, W, S, B)


def linear_be_ref(x, R, W, S, B):
    # Pure-JAX reference mirroring the PyTorch forward (exact f32 matmul so
    # the comparison against the HIGHEST-precision kernel is meaningful).
    return jnp.einsum("bki,io->bko", x * R, W,
                      precision=jax.lax.Precision.HIGHEST) * S + B


if __name__ == "__main__":
    # Small shapes consistent with the module: batch=2, k=32 (default),
    # dim_in=16, dim_out=32.
    batch, k, dim_in, dim_out = 2, 32, 16, 32
    key = jax.random.PRNGKey(0)
    kx, kr, kw, ks, kb = jax.random.split(key, 5)

    # Parameter init matching init='uniform', amplitude_init=1.0:
    #   R, S ~ U(-1, 1); W, B ~ N(0, 1)
    x = jax.random.normal(kx, (batch, k, dim_in), dtype=jnp.float32)
    R = jax.random.uniform(kr, (k, dim_in), minval=-1.0, maxval=1.0,
                           dtype=jnp.float32)
    W = jax.random.normal(kw, (dim_in, dim_out), dtype=jnp.float32)
    S = jax.random.uniform(ks, (k, dim_out), minval=-1.0, maxval=1.0,
                           dtype=jnp.float32)
    B = jax.random.normal(kb, (k, dim_out), dtype=jnp.float32)

    out = jax.block_until_ready(linear_be(x, R, W, S, B))
    ref = linear_be_ref(x, R, W, S, B)

    assert out.shape == (batch, k, dim_out)
    assert jnp.allclose(out, ref, atol=1e-5, rtol=1e-5)
    print("KERNEL_OK")
</pallas_src>

<mosaic_0001>
module attributes {stable_mosaic.version = 11 : i64} {
  func.func @_linear_be_kernel(%arg0: i32, %arg1: i32, %arg2: memref<1x32x16xf32, #tpu.memory_space<vmem>>, %arg3: memref<32x16xf32, #tpu.memory_space<vmem>>, %arg4: memref<16x32xf32, #tpu.memory_space<vmem>>, %arg5: memref<32x32xf32, #tpu.memory_space<vmem>>, %arg6: memref<32x32xf32, #tpu.memory_space<vmem>>, %arg7: memref<1x32x32xf32, #tpu.memory_space<vmem>>) attributes {dimension_semantics = [#tpu.dimension_semantics<parallel>, #tpu.dimension_semantics<parallel>], iteration_bounds = array<i64: 2, 1>, scalar_prefetch = 0 : i64, scratch_operands = 0 : i64, tpu.core_type = #tpu.core_type<tc>, window_params = [{transform_indices = @transform_0, window_bounds = array<i64: 1, 32, 16>}, {pipeline_mode = #tpu.pipeline_mode<synchronous>, transform_indices = @transform_1, window_bounds = array<i64: 32, 16>}, {pipeline_mode = #tpu.pipeline_mode<synchronous>, transform_indices = @transform_2, window_bounds = array<i64: 16, 32>}, {pipeline_mode = #tpu.pipeline_mode<synchronous>, transform_indices = @transform_3, window_bounds = array<i64: 32, 32>}, {pipeline_mode = #tpu.pipeline_mode<synchronous>, transform_indices = @transform_4, window_bounds = array<i64: 32, 32>}, {transform_indices = @transform_5, window_bounds = array<i64: 1, 32, 32>}]} {
    %c0 = arith.constant 0 : index
    %c0_0 = arith.constant 0 : index
    %c0_1 = arith.constant 0 : index
    %0 = vector.load %arg2[%c0, %c0_0, %c0_1] : memref<1x32x16xf32, #tpu.memory_space<vmem>>, vector<1x32x16xf32>
    %c0_2 = arith.constant 0 : index
    %c0_3 = arith.constant 0 : index
    %1 = vector.load %arg3[%c0_2, %c0_3] : memref<32x16xf32, #tpu.memory_space<vmem>>, vector<32x16xf32>
    %2 = vector.shape_cast %1 : vector<32x16xf32> to vector<1x32x16xf32>
    %3 = arith.mulf %0, %2 : vector<1x32x16xf32>
    %4 = vector.shape_cast %3 : vector<1x32x16xf32> to vector<32x16xf32>
    %c0_4 = arith.constant 0 : index
    %c0_5 = arith.constant 0 : index
    %5 = vector.load %arg4[%c0_4, %c0_5] : memref<16x32xf32, #tpu.memory_space<vmem>>, vector<16x32xf32>
    %cst = arith.constant dense<0.000000e+00> : vector<32x32xf32>
    %6 = tpu.matmul %4, %5, %cst {dimension_numbers = #tpu.dot_dimension_numbers<[1], [0], [0], [1], [0, 0, 1, 1], [], []>, precision = #tpu.contract_precision<fp32>} : vector<32x16xf32>, vector<16x32xf32>, vector<32x32xf32> -> vector<32x32xf32>
    %7 = vector.shape_cast %6 : vector<32x32xf32> to vector<1x32x32xf32>
    %c0_6 = arith.constant 0 : index
    %c0_7 = arith.constant 0 : index
    %8 = vector.load %arg5[%c0_6, %c0_7] : memref<32x32xf32, #tpu.memory_space<vmem>>, vector<32x32xf32>
    %9 = vector.shape_cast %8 : vector<32x32xf32> to vector<1x32x32xf32>
    %10 = arith.mulf %7, %9 : vector<1x32x32xf32>
    %c0_8 = arith.constant 0 : index
    %c0_9 = arith.constant 0 : index
    %11 = vector.load %arg6[%c0_8, %c0_9] : memref<32x32xf32, #tpu.memory_space<vmem>>, vector<32x32xf32>
    %12 = vector.shape_cast %11 : vector<32x32xf32> to vector<1x32x32xf32>
    %13 = arith.addf %10, %12 : vector<1x32x32xf32>
    %c0_10 = arith.constant 0 : index
    %c0_11 = arith.constant 0 : index
    %c0_12 = arith.constant 0 : index
    %14 = vector.load %arg7[%c0_10, %c0_11, %c0_12] : memref<1x32x32xf32, #tpu.memory_space<vmem>>, vector<1x32x32xf32>
    tpu.vector_store %arg7[%c0_10, %c0_11, %c0_12], %13 {strides = array<i32>} : memref<1x32x32xf32, #tpu.memory_space<vmem>>, vector<1x32x32xf32>,
    return
  }
  func.func @transform_0(%arg0: i32, %arg1: i32) -> (i32, i32, i32) {
    %c0_i32 = arith.constant 0 : i32
    %c0_i32_0 = arith.constant 0 : i32
    %c0_i32_1 = arith.constant 0 : i32
    return %arg0, %c0_i32, %c0_i32_0 : i32, i32, i32
  }
  func.func @transform_1(%arg0: i32, %arg1: i32) -> (i32, i32) {
    %c0_i32 = arith.constant 0 : i32
    %c0_i32_0 = arith.constant 0 : i32
    %c0_i32_1 = arith.constant 0 : i32
    return %c0_i32, %c0_i32_0 : i32, i32
  }
  func.func @transform_2(%arg0: i32, %arg1: i32) -> (i32, i32) {
    %c0_i32 = arith.constant 0 : i32
    %c0_i32_0 = arith.constant 0 : i32
    return %c0_i32, %arg1 : i32, i32
  }
  func.func @transform_3(%arg0: i32, %arg1: i32) -> (i32, i32) {
    %c0_i32 = arith.constant 0 : i32
    %c0_i32_0 = arith.constant 0 : i32
    return %c0_i32, %arg1 : i32, i32
  }
  func.func @transform_4(%arg0: i32, %arg1: i32) -> (i32, i32) {
    %c0_i32 = arith.constant 0 : i32
    %c0_i32_0 = arith.constant 0 : i32
    return %c0_i32, %arg1 : i32, i32
  }
  func.func @transform_5(%arg0: i32, %arg1: i32) -> (i32, i32, i32) {
    %c0_i32 = arith.constant 0 : i32
    %c0_i32_0 = arith.constant 0 : i32
    return %arg0, %c0_i32, %arg1 : i32, i32, i32
  }
}

module attributes {stable_mosaic.version = 11 : i64} {
  func.func @_linear_be_kernel(%arg0: i32, %arg1: i32, %arg2: memref<1x32x16xf32, #tpu.memory_space<vmem>>, %arg3: memref<32x16xf32, #tpu.memory_space<vmem>>, %arg4: memref<16x32xf32, #tpu.memory_space<vmem>>, %arg5: memref<32x32xf32, #tpu.memory_space<vmem>>, %arg6: memref<32x32xf32, #tpu.memory_space<vmem>>, %arg7: memref<1x32x32xf32, #tpu.memory_space<vmem>>) attributes {dimension_semantics = [#tpu.dimension_semantics<parallel>, #tpu.dimension_semantics<parallel>], iteration_bounds = array<i64: 2, 1>, scalar_prefetch = 0 : i64, scratch_operands = 0 : i64, tpu.core_type = #tpu.core_type<tc>, window_params = [{transform_indices = @transform_0, window_bounds = array<i64: 1, 32, 16>}, {pipeline_mode = #tpu.pipeline_mode<synchronous>, transform_indices = @transform_1, window_bounds = array<i64: 32, 16>}, {transform_indices = @transform_2, window_bounds = array<i64: 16, 32>}, {transform_indices = @transform_3, window_bounds = array<i64: 32, 32>}, {transform_indices = @transform_4, window_bounds = array<i64: 32, 32>}, {transform_indices = @transform_5, window_bounds = array<i64: 1, 32, 32>}]} {
    %c0 = arith.constant 0 : index
    %c0_0 = arith.constant 0 : index
    %c0_1 = arith.constant 0 : index
    %0 = vector.load %arg2[%c0, %c0_0, %c0_1] : memref<1x32x16xf32, #tpu.memory_space<vmem>>, vector<1x32x16xf32>
    %c0_2 = arith.constant 0 : index
    %c0_3 = arith.constant 0 : index
    %1 = vector.load %arg3[%c0_2, %c0_3] : memref<32x16xf32, #tpu.memory_space<vmem>>, vector<32x16xf32>
    %2 = vector.shape_cast %1 : vector<32x16xf32> to vector<1x32x16xf32>
    %3 = arith.mulf %0, %2 : vector<1x32x16xf32>
    %4 = vector.shape_cast %3 : vector<1x32x16xf32> to vector<32x16xf32>
    %c0_4 = arith.constant 0 : index
    %c0_5 = arith.constant 0 : index
    %5 = vector.load %arg4[%c0_4, %c0_5] : memref<16x32xf32, #tpu.memory_space<vmem>>, vector<16x32xf32>
    %cst = arith.constant dense<0.000000e+00> : vector<32x32xf32>
    %6 = tpu.matmul %4, %5, %cst {dimension_numbers = #tpu.dot_dimension_numbers<[1], [0], [0], [1], [0, 0, 1, 1], [], []>, precision = #tpu.contract_precision<fp32>} : vector<32x16xf32>, vector<16x32xf32>, vector<32x32xf32> -> vector<32x32xf32>
    %7 = vector.shape_cast %6 : vector<32x32xf32> to vector<1x32x32xf32>
    %c0_6 = arith.constant 0 : index
    %c0_7 = arith.constant 0 : index
    %8 = vector.load %arg5[%c0_6, %c0_7] : memref<32x32xf32, #tpu.memory_space<vmem>>, vector<32x32xf32>
    %9 = vector.shape_cast %8 : vector<32x32xf32> to vector<1x32x32xf32>
    %10 = arith.mulf %7, %9 : vector<1x32x32xf32>
    %c0_8 = arith.constant 0 : index
    %c0_9 = arith.constant 0 : index
    %11 = vector.load %arg6[%c0_8, %c0_9] : memref<32x32xf32, #tpu.memory_space<vmem>>, vector<32x32xf32>
    %12 = vector.shape_cast %11 : vector<32x32xf32> to vector<1x32x32xf32>
    %13 = arith.addf %10, %12 : vector<1x32x32xf32>
    %c0_10 = arith.constant 0 : index
    %c0_11 = arith.constant 0 : index
    %c0_12 = arith.constant 0 : index
    %14 = vector.load %arg7[%c0_10, %c0_11, %c0_12] : memref<1x32x32xf32, #tpu.memory_space<vmem>>, vector<1x32x32xf32>
    tpu.vector_store %arg7[%c0_10, %c0_11, %c0_12], %13 {strides = array<i32>} : memref<1x32x32xf32, #tpu.memory_space<vmem>>, vector<1x32x32xf32>,
    return
  }
  func.func @transform_0(%arg0: i32, %arg1: i32) -> (i32, i32, i32) {
    %c0_i32 = arith.constant 0 : i32
    %c0_i32_0 = arith.constant 0 : i32
    %c0_i32_1 = arith.constant 0 : i32
    return %arg0, %c0_i32, %c0_i32_0 : i32, i32, i32
  }
  func.func @transform_1(%arg0: i32, %arg1: i32) -> (i32, i32) {
    %c0_i32 = arith.constant 0 : i32
    %c0_i32_0 = arith.constant 0 : i32
    %c0_i32_1 = arith.constant 0 : i32
    return %c0_i32, %c0_i32_0 : i32, i32
  }
  func.func @transform_2(%arg0: i32, %arg1: i32) -> (i32, i32) {
    %c0_i32 = arith.constant 0 : i32
    %c0_i32_0 = arith.constant 0 : i32
    return %c0_i32, %arg1 : i32, i32
  }
  func.func @transform_3(%arg0: i32, %arg1: i32) -> (i32, i32) {
    %c0_i32 = arith.constant 0 : i32
    %c0_i32_0 = arith.constant 0 : i32
    return %c0_i32, %arg1 : i32, i32
  }
  func.func @transform_4(%arg0: i32, %arg1: i32) -> (i32, i32) {
    %c0_i32 = arith.constant 0 : i32
    %c0_i32_0 = arith.constant 0 : i32
    return %c0_i32, %arg1 : i32, i32
  }
  func.func @transform_5(%arg0: i32, %arg1: i32) -> (i32, i32, i32) {
    %c0_i32 = arith.constant 0 : i32
    %c0_i32_0 = arith.constant 0 : i32
    return %arg0, %c0_i32, %arg1 : i32, i32, i32
  }
}

</mosaic_0001>

<bundles_post_ra>
// kernel: tpu_custom_call.1
= control target key start
LH: loop header
LB: loop body
LE: loop exit
PB: predicated region body
PF: predicated region fallthrough
CT: control target
= control target key end

     0   :  { %10 = vsyncpa [#allocation3], 0  ;;  %s1071_s0 = inlined_call_operand.vmem [shape: f32[2,32,16], index: 0, kind: input, shape index: {}]   ;;  %s1072_s1 = inlined_call_operand.vmem [shape: f32[32,16], index: 1, kind: input, shape index: {}]   ;;  %s1073_s2 = inlined_call_operand.vmem [shape: f32[16,32], index: 2, kind: input, shape index: {}]   ;;  %s1074_s3 = inlined_call_operand.vmem [shape: f32[32,32], index: 3, kind: input, shape index: {}]   ;;  %s1075_s4 = inlined_call_operand.vmem [shape: f32[32,32], index: 4, kind: input, shape index: {}]   ;;  %s1076_s5 = inlined_call_operand.hbm [shape: f32[2,32,32], index: 5, kind: output, shape index: {}]  }
   0x1   :  { %12 = vsyncpa [#allocation3 + $0x1], 0  ;;  %s913_s18 = smov 0   ;;  %s915_s19 = smov 0  }
   0x2   :  { %s917_s20 = smov 0   ;;  %s919_s21 = smov 0  }
   0x3   :  { %s921_s22 = smov 0   ;;  %s923_s23 = smov 0  }
   0x4 LB: > { %s722_s24 = sadd.s32 4294967295, %s879_s23   ;;  %s723_s25 = sadd.s32 4294967294, %s879_s23   ;;  %s879_s23 = sphi %s923_s23, %s18_s23   ;;  %s875_s22 = sphi %s921_s22, %s1083_s22   ;;  %s871_s21 = sphi %s919_s21, %s1082_s21   ;;  %s867_s20 = sphi %s917_s20, %s1081_s20   ;;  %s863_s19 = sphi %s915_s19, %s1080_s19   ;;  %s859_s18 = sphi %s913_s18, %s1079_s18  }
   0x5   : > { %s30_s26 = sadd.s32 1, %s875_s22  ;;  %s164_s27 = sadd.s32 1, %s867_s20 }
   0x6   : > { %p32_p0 = scmp.ge.s32.totalorder %s30_s26, 2  ;;  %p174_p1 = scmp.ne.s32.totalorder %s867_s20, %s863_s19 }
   0x7   : > { %p175_p2 = scmp.eq.s32.totalorder %s722_s24, 1  ;;  %p180_p3 = scmp.ne.s32.totalorder %s863_s19, %s859_s18 }
   0x8   : > { %s1085_s26 = smov (%p32_p0, %s30_s26), 0  ;;  %p181_p5 = scmp.eq.s32.totalorder %s723_s25, 1 }
   0x9   : > { %p953_p4 = por %p175_p2, %p174_p1  ;;  %s159_s29 = ssub.s32 %s875_s22, %s1085_s26 }
   0xa   : > { %p729_p6 = scmp.ge.s32.totalorder %s879_s23, 1  ;;  %p162_p7 = scmp.eq.s32.totalorder %s159_s29, 0 }
   0xb   : > { %p960_p8 = por %p181_p5, %p180_p3  ;;  %p231_p9 = scmp.lt.s32.totalorder %s879_s23, 3 }
   0xc   : > { %s966_s6 = scalar_select %p162_p7, %s867_s20, %s164_s27  }
   0xd   : > { %p232_p10 = pnand %p729_p6, %p231_p9 }
   0xe   : > { %p271_p11 = scmp.lt.s32.totalorder (!%p232_p10), %s871_s21, 1  ;;  %s268_s9 = sand.u32 (!%p232_p10), 1, %s863_s19  }
   0xf   : > { %235 = sbr.rel (%p232_p10) target bundleno = 226 (0xe2), region = 40  ;;  %s739_s10 = sshll.u32 (!%p232_p10), %s871_s21, 5 }
  0x10   : > { %s601_s13 = scalar_lea.hbm (!%p232_p10), %s1076_s5, %s739_s10  ;;  %s589_s27 = scalar_lea.sflag (!%p232_p10), [#allocation3], %s268_s9 }
  0x11   : > { %s604_s17 = sshll.u32 (!%p232_p10), %s601_s13, 4  ;;  %s605_s17 = int_to_ptr.hbm [resolvable:$true] %s604_s17 }
  0x12   : > { %s815_s29 = sshra.s32 (!%p232_p10), %s605_s17, 4  ;;  %s816_s29 = int_to_ptr.hbm [resolvable:$true] %s815_s29 }
  0x13   : > { %s817_s7 = scalar_lea.hbm (!%p232_p10), %s816_s29, 32  ;;  %p822_p1 = scmp.lt.s32.totalorder (!%p232_p10), %s816_s29, %s1076_s5 }
  0x14   : > { %v301_v0 = vld [vmem:[%s1073_s2 + $0x8] sm:$0xff]  ;;  %v300_v1 = vld [vmem:[%s1073_s2] sm:$0xff]  ;;  %s272_s11 = scalar_select %p271_p11, %s871_s21, 1  ;;  %v294_v6 = vld [vmem:[%s1072_s1 + $0x10] sm:$0xff]  ;;  %vm302_vm0 = vcmask 130048   ;;  %vm583_vm1 = vcmask 261120  }
  0x15   : > { %v329_v2 = vand.u32 4294901760, %v301_v0  ;;  %v331_v3 = vand.u32 4294901760, %v300_v1  ;;  %v295_v7 = vld [vmem:[%s1072_s1 + $0x18] sm:$0xff]  ;;  %v292_v10 = vld [vmem:[%s1072_s1] sm:$0xff]  ;;  %v293_v11 = vld [vmem:[%s1072_s1 + $0x8] sm:$0xff]  ;;  %p818_p12 = scmp.ne.s32.totalorder %s816_s29, %s817_s7 }
  0x16   : > { %s738_s12 = sshll.u32 %s272_s11, 5  ;;  %s821_s11 = scalar_lea.hbm %s1076_s5, 64 }
  0x17   : > { %740 = vmatpush.msra.mxu2 %v329_v2  ;;  %v381_v4 = vsub.f32 %v301_v0, %v329_v2  ;;  %v387_v5 = vsub.f32 %v300_v1, %v331_v3  ;;  %330 = vmatpush.msra.mxu0 %v329_v2  ;;  %s275_s25 = scalar_lea.vmem %s1071_s0, %s738_s12  ;;  %v567_v1 = vld [vmem:[%s1074_s3] sm:$0xff]  ;;  %s730_s12 = sshll.u32 %s268_s9, 5 }
  0x18   : > { %v290_v12 = vld [vmem:[%s275_s25 + $0x10] sm:$0xff]  ;;  %v291_v13 = vld [vmem:[%s275_s25 + $0x18] sm:$0xff]  ;;  %v288_v14 = vld [vmem:[%s275_s25] sm:$0xff]  ;;  %s1004_s15 = scalar_lea.vmem [#allocation2], %s730_s12  ;;  %p819_p13 = pnand %p818_p12, %p953_p4 }
  0x19   : > { %v382_v8 = vand.u32 4294901760, %v381_v4  ;;  %741 = vmatpush.msra.mxu2 %v331_v3  ;;  %v388_v9 = vand.u32 4294901760, %v387_v5  ;;  %332 = vmatpush.msra.mxu0 %v331_v3  ;;  %v298_v17 = vmul.f32 %v294_v6, %v290_v12  ;;  %v299_v18 = vmul.f32 %v295_v7, %v291_v13  ;;  %v289_v19 = vld [vmem:[%s275_s25 + $0x8] sm:$0xff]  ;;  %s602_s21 = sshll.u32 %s1004_s15, 4  ;;  %p823_p2 = scmp.lt.s32.totalorder %s821_s11, %s817_s7  ;;  %s603_s21 = int_to_ptr.vmem [resolvable:$true] %s602_s21 }
  0x1a   : > { %v296_v20 = vmul.f32 %v292_v10, %v288_v14  ;;  %v297_v21 = vmul.f32 %v293_v11, %v289_v19  ;;  %v568_v13 = vld [vmem:[%s1074_s3 + $0x8] sm:$0xff]  ;;  %p820_p0 = pneg %p819_p13 }
  0x1b   : > { %425 = vmatpush.msrb.mxu2 %v381_v4  ;;  %v383_v15 = vsub.f32 %v381_v4, %v382_v8  ;;  %v389_v16 = vsub.f32 %v387_v5, %v388_v9  ;;  %510 = vmatpush.msrb.mxu0 %v382_v8  ;;  %v310_v24 = vsel %vm302_vm0, %v298_v17, 0  ;;  %v313_v25 = vsel %vm302_vm0, %v299_v18, 0  ;;  %v576_v17 = vld [vmem:[%s1075_s4 + $0x8] sm:$0xff]  ;;  %p824_p3 = por %p823_p2, %p822_p1 }
  0x1c   : > { %v349_v26 = vand.u32 4294901760, %v310_v24  ;;  %v357_v27 = vand.u32 4294901760, %v313_v25  ;;  %v304_v28 = vsel %vm302_vm0, %v296_v20, 0  ;;  %v307_v29 = vsel %vm302_vm0, %v297_v21, 0 }
  0x1d   : > { %428 = vmatpush.msrb.mxu2 %v387_v5  ;;  %v384_v22 = vand.u32 4294901760, %v383_v15  ;;  %v390_v23 = vand.u32 4294901760, %v389_v16  ;;  %514 = vmatpush.msrb.mxu0 %v388_v9  ;;  %v333_v30 = vand.u32 4294901760, %v304_v28  ;;  %v341_v31 = vand.u32 4294901760, %v307_v29  ;;  %v575_v5 = vld [vmem:[%s1075_s4] sm:$0xff]  ;;  %p825_p5 = pnand %p824_p3, %p820_p0 }
  0x1e   : > { %v350_v32 = vsub.f32 %v310_v24, %v349_v26  ;;  %v358_v33 = vsub.f32 %v313_v25, %v357_v27 }
  0x1f   : > { %742 = vmatpush.msra.mxu3 %v384_v22  ;;  %385 = vmatpush.msra.mxu1 %v384_v22  ;;  %v334_v34 = vsub.f32 %v304_v28, %v333_v30  ;;  %v342_v35 = vsub.f32 %v307_v29, %v341_v31  ;;  %v577_v29 = vld [vmem:[%s1075_s4 + $0x10] sm:$0xff] }
  0x20   : > { %v351_v36 = vand.u32 4294901760, %v350_v32  ;;  %v359_v39 = vand.u32 4294901760, %v358_v33 }
  0x21   : > { %743 = vmatpush.msra.mxu3 %v390_v23  ;;  %391 = vmatpush.msra.mxu1 %v390_v23  ;;  %v335_v37 = vand.u32 4294901760, %v334_v34  ;;  %v343_v41 = vand.u32 4294901760, %v342_v35 }
  0x22   : > { %401 = vmatmul.f32.vlgmr.msra.gmra.mxu3 %v349_v26  ;;  %393 = vmatmul.f32.vlgmr.msra.gmra.mxu1 %v333_v30  ;;  %v352_v38 = vsub.f32 %v350_v32, %v351_v36  ;;  %v360_v44 = vsub.f32 %v358_v33, %v359_v39 }
  0x23   : > { %465 = vmatpush.msrb.mxu3 %v329_v2  ;;  %547 = vmatpush.msrb.mxu1 %v329_v2  ;;  %v336_v40 = vsub.f32 %v334_v34, %v335_v37  ;;  %v344_v45 = vsub.f32 %v342_v35, %v343_v41 }
  0x24   : > { %v353_v42 = vand.u32 4294901760, %v352_v38  ;;  %v361_v46 = vand.u32 4294901760, %v360_v44 }
  0x25   : > { %467 = vmatpush.msrb.mxu3 %v331_v3  ;;  %549 = vmatpush.msrb.mxu1 %v331_v3  ;;  %v337_v43 = vand.u32 4294901760, %v336_v40  ;;  %v345_v47 = vand.u32 4294901760, %v344_v45 }
  0x26   : > { %354 = vmatmul.f32.vlgmr.msra.gmra.mxu2 %v353_v42 }
  0x27   : > { %338 = vmatmul.f32.vlgmr.msra.gmra.mxu0 %v337_v43 }
  0x2a   : > { %405 = vmatmul.f32.gmra.mxu3 %v357_v27  ;;  %397 = vmatmul.f32.gmra.mxu1 %v341_v31 }
  0x2e   : > { %362 = vmatmul.f32.gmra.mxu2 %v361_v46 }
  0x2f   : > { %346 = vmatmul.f32.gmra.mxu0 %v345_v47 }
  0x32   : > { %471 = vmatmul.f32.vlgmr.msrb.gmra.mxu3 %v335_v37  ;;  %551 = vmatmul.f32.vlgmr.msrb.gmra.mxu1 %v333_v30 }
  0x36   : > { %431 = vmatmul.f32.vlgmr.msrb.gmra.mxu2 %v334_v34 }
  0x37   : > { %516 = vmatmul.f32.vlgmr.msrb.gmra.mxu0 %v333_v30 }
  0x3a   : > { %477 = vmatmul.f32.gmra.mxu3 %v343_v41  ;;  %555 = vmatmul.f32.gmra.mxu1 %v341_v31  ;;  %v578_v41 = vld [vmem:[%s1075_s4 + $0x18] sm:$0xff] }
  0x3e   : > { %436 = vmatmul.f32.gmra.mxu2 %v342_v35 }
  0x3f   : > { %520 = vmatmul.f32.gmra.mxu0 %v341_v31 }
  0x42   : > { %483 = vmatmul.f32.gmra.mxu3 %v351_v36  ;;  %559 = vmatmul.f32.gmra.mxu1 %v349_v26 }
  0x46   : > { %441 = vmatmul.f32.gmra.mxu2 %v350_v32 }
  0x47   : > { %524 = vmatmul.f32.gmra.mxu0 %v349_v26  ;;  %v569_v26 = vld [vmem:[%s1074_s3 + $0x10] sm:$0xff] }
  0x4a   : > { %489 = vmatmul.f32.gmra.mxu3 %v359_v39  ;;  %563 = vmatmul.f32.gmra.mxu1 %v357_v27  ;;  %v570_v39 = vld [vmem:[%s1074_s3 + $0x18] sm:$0xff] }
  0x4e   : > { %446 = vmatmul.f32.gmra.mxu2 %v358_v33 }
  0x4f   : > { %528 = vmatmul.f32.gmra.mxu0 %v357_v27 }
  0x9f   : > { %v394_v50 = vpop.f32.mrf.mxu1 }
  0xa4   : > { %v339_v49 = vpop.f32.mrf.mxu0 }
  0xa5   : > { %v402_v48 = vpop.f32.mrf.mxu3  ;;  %v395_v59 = vadd.f32 %v394_v50, %v339_v49 }
  0xa7   : > { %v398_v54 = vpop.f32.mrf.mxu1 }
  0xa9   : > { %v355_v51 = vpop.f32.mrf.mxu2 }
  0xaa   : > { %v403_v15 = vadd.f32 %v402_v48, %v355_v51 }
  0xac   : > { %v347_v53 = vpop.f32.mrf.mxu0 }
  0xad   : > { %v406_v52 = vpop.f32.mrf.mxu3  ;;  %v399_v3 = vadd.f32 %v398_v54, %v347_v53 }
  0xaf   : > { %v552_v58 = vpop.f32.mrf.mxu1 }
  0xb1   : > { %v363_v55 = vpop.f32.mrf.mxu2 }
  0xb2   : > { %v407_v27 = vadd.f32 %v406_v52, %v363_v55 }
  0xb4   : > { %v517_v57 = vpop.f32.mrf.mxu0 }
  0xb5   : > { %v472_v56 = vpop.f32.mrf.mxu3 }
  0xb7   : > { %v556_v7 = vpop.f32.mrf.mxu1 }
  0xb9   : > { %v432_v60 = vpop.f32.mrf.mxu2 }
  0xba   : > { %v433_v61 = vadd.f32 %v432_v60, %v395_v59 }
  0xbc   : > { %v473_v62 = vadd.f32 %v472_v56, %v433_v61  ;;  %v521_v2 = vpop.f32.mrf.mxu0 }
  0xbd   : > { %v478_v63 = vpop.f32.mrf.mxu3 }
  0xbe   : > { %v518_v0 = vadd.f32 %v517_v57, %v473_v62 }
  0xbf   : > { %v560_v22 = vpop.f32.mrf.mxu1 }
  0xc0   : > { %v553_v4 = vadd.f32 %v552_v58, %v518_v0 }
  0xc1   : > { %v437_v6 = vpop.f32.mrf.mxu2 }
  0xc2   : > { %v571_v8 = vmul.f32 %v567_v1, %v553_v4  ;;  %v438_v9 = vadd.f32 %v437_v6, %v399_v3 }
  0xc4   : > { %v579_v10 = vadd.f32 %v575_v5, %v571_v8  ;;  %v479_v11 = vadd.f32 %v478_v63, %v438_v9  ;;  %v525_v19 = vpop.f32.mrf.mxu0 }
  0xc5   : > { %v484_v14 = vpop.f32.mrf.mxu3 }
  0xc6   : > { %584 = vst.msk [vmem:[%s1004_s15] sm:$0xff] %vm583_vm1, %v579_v10  ;;  %v522_v12 = vadd.f32 %v521_v2, %v479_v11 }
  0xc7   : > { %v564_v37 = vpop.f32.mrf.mxu1 }
  0xc8   : > { %v557_v16 = vadd.f32 %v556_v7, %v522_v12 }
  0xc9   : > { %v442_v18 = vpop.f32.mrf.mxu2 }
  0xca   : > { %v572_v20 = vmul.f32 %v568_v13, %v557_v16  ;;  %v443_v21 = vadd.f32 %v442_v18, %v403_v15 }
  0xcc   : > { %v580_v23 = vadd.f32 %v576_v17, %v572_v20  ;;  %v485_v24 = vadd.f32 %v484_v14, %v443_v21  ;;  %v529_v34 = vpop.f32.mrf.mxu0 }
  0xcd   : > { %v490_v31 = vpop.f32.mrf.mxu3 }
  0xce   : > { %585 = vst.msk [vmem:[%s1004_s15 + $0x8] sm:$0xff] %vm583_vm1, %v580_v23  ;;  %v526_v25 = vadd.f32 %v525_v19, %v485_v24 }
  0xd0   : > { %v561_v28 = vadd.f32 %v560_v22, %v526_v25 }
  0xd1   : > { %v447_v30 = vpop.f32.mrf.mxu2 }
  0xd2   : > { %v573_v32 = vmul.f32 %v569_v26, %v561_v28  ;;  %v448_v33 = vadd.f32 %v447_v30, %v407_v27 }
  0xd4   : > { %v581_v35 = vadd.f32 %v577_v29, %v573_v32  ;;  %v491_v36 = vadd.f32 %v490_v31, %v448_v33 }
  0xd6   : > { %586 = vst.msk [vmem:[%s1004_s15 + $0x10] sm:$0xff] %vm583_vm1, %v581_v35  ;;  %v530_v38 = vadd.f32 %v529_v34, %v491_v36 }
  0xd8   : > { %v565_v40 = vadd.f32 %v564_v37, %v530_v38 }
  0xda   : > { %v574_v42 = vmul.f32 %v570_v39, %v565_v40 }
  0xdc   : > { %v582_v43 = vadd.f32 %v578_v41, %v574_v42 }
  0xde   : > { %587 = vst.msk [vmem:[%s1004_s15 + $0x18] sm:$0xff] %vm583_vm1, %v582_v43 }
  0xdf   : > { %828 = shalt.err (!%p825_p5)
}
  0xe0   : > { %s881_s9 = smov 128   ;;  %s882_s15 = smov 8  }
  0xe1   : > { %744 = dma.vmem_to_hbm [thread:$0]  (%p953_p4), %s603_s21, 512, %s605_s17, %s589_s27, %s881_s9, %s881_s9, %s882_s15  }
  0xe2 PF: > { %p750_p6 = scmp.ge.s32.totalorder %s879_s23, 2  ;;  %s619_s14 = sand.u32 1, %s859_s18  }
  0xe3   : > { %s620_s16 = scalar_lea.sflag [#allocation3], %s619_s14 }
  0xe4   : > { %p747_p7 = pnand %p750_p6, %p960_p8 }
  0xe6   : > { %p748_p9 = pneg %p747_p7 }
  0xe8   : > { %854 = dma.done.wait (%p748_p9), %s620_s16, 512  }
  0xe9   : > { %856 = vsyncadd (%p748_p9), %s620_s16, 4294966784  ;;  %s18_s23 = sadd.s32 1, %s879_s23   ;;  %s1079_s18 = smov %s863_s19 }
  0xea   : > { %p15_p10 = scmp.ge.s32.totalorder %s18_s23, 4   ;;  %s1080_s19 = smov %s867_s20 }
  0xeb   : > { %s1081_s20 = smov %s966_s6  ;;  %s1082_s21 = smov %s875_s22 }
  0xec   : > { %s1083_s22 = smov %s1085_s26  ;;  %17 = sbr.rel (!%p15_p10) target bundleno = 4 (0x4), region = 84 }
  0xf1   :  { %626 = vsyncpa [#allocation3], 1 }
  0xf2   :  { %628 = vsyncpa [#allocation3 + $0x1], 1 }

// kernel: tpu_custom_call.1
= control target key start
LH: loop header
LB: loop body
LE: loop exit
PB: predicated region body
PF: predicated region fallthrough
CT: control target
= control target key end

     0   :  { %10 = vsyncpa [#allocation3], 0  ;;  %s1071_s0 = inlined_call_operand.vmem [shape: f32[2,32,16], index: 0, kind: input, shape index: {}]   ;;  %s1072_s1 = inlined_call_operand.vmem [shape: f32[32,16], index: 1, kind: input, shape index: {}]   ;;  %s1073_s2 = inlined_call_operand.vmem [shape: f32[16,32], index: 2, kind: input, shape index: {}]   ;;  %s1074_s3 = inlined_call_operand.vmem [shape: f32[32,32], index: 3, kind: input, shape index: {}]   ;;  %s1075_s4 = inlined_call_operand.vmem [shape: f32[32,32], index: 4, kind: input, shape index: {}]   ;;  %s1076_s5 = inlined_call_operand.hbm [shape: f32[2,32,32], index: 5, kind: output, shape index: {}]  }
   0x1   :  { %12 = vsyncpa [#allocation3 + $0x1], 0  ;;  %s913_s18 = smov 0   ;;  %s915_s19 = smov 0  }
   0x2   :  { %s917_s20 = smov 0   ;;  %s919_s21 = smov 0  }
   0x3   :  { %s921_s22 = smov 0   ;;  %s923_s23 = smov 0  }
   0x4 LB: > { %s722_s24 = sadd.s32 4294967295, %s879_s23   ;;  %s723_s25 = sadd.s32 4294967294, %s879_s23   ;;  %s879_s23 = sphi %s923_s23, %s18_s23   ;;  %s875_s22 = sphi %s921_s22, %s1083_s22   ;;  %s871_s21 = sphi %s919_s21, %s1082_s21   ;;  %s867_s20 = sphi %s917_s20, %s1081_s20   ;;  %s863_s19 = sphi %s915_s19, %s1080_s19   ;;  %s859_s18 = sphi %s913_s18, %s1079_s18  }
   0x5   : > { %s30_s26 = sadd.s32 1, %s875_s22  ;;  %s164_s27 = sadd.s32 1, %s867_s20 }
   0x6   : > { %p32_p0 = scmp.ge.s32.totalorder %s30_s26, 2  ;;  %p174_p1 = scmp.ne.s32.totalorder %s867_s20, %s863_s19 }
   0x7   : > { %p175_p2 = scmp.eq.s32.totalorder %s722_s24, 1  ;;  %p180_p3 = scmp.ne.s32.totalorder %s863_s19, %s859_s18 }
   0x8   : > { %s1085_s26 = smov (%p32_p0, %s30_s26), 0  ;;  %p181_p5 = scmp.eq.s32.totalorder %s723_s25, 1 }
   0x9   : > { %p953_p4 = por %p175_p2, %p174_p1  ;;  %s159_s29 = ssub.s32 %s875_s22, %s1085_s26 }
   0xa   : > { %p729_p6 = scmp.ge.s32.totalorder %s879_s23, 1  ;;  %p162_p7 = scmp.eq.s32.totalorder %s159_s29, 0 }
   0xb   : > { %p960_p8 = por %p181_p5, %p180_p3  ;;  %p231_p9 = scmp.lt.s32.totalorder %s879_s23, 3 }
   0xc   : > { %s966_s6 = scalar_select %p162_p7, %s867_s20, %s164_s27  }
   0xd   : > { %p232_p10 = pnand %p729_p6, %p231_p9 }
   0xe   : > { %p271_p11 = scmp.lt.s32.totalorder (!%p232_p10), %s871_s21, 1  ;;  %s268_s9 = sand.u32 (!%p232_p10), 1, %s863_s19  }
   0xf   : > { %235 = sbr.rel (%p232_p10) target bundleno = 226 (0xe2), region = 40  ;;  %s739_s10 = sshll.u32 (!%p232_p10), %s871_s21, 5 }
  0x10   : > { %s601_s13 = scalar_lea.hbm (!%p232_p10), %s1076_s5, %s739_s10  ;;  %s589_s27 = scalar_lea.sflag (!%p232_p10), [#allocation3], %s268_s9 }
  0x11   : > { %s604_s17 = sshll.u32 (!%p232_p10), %s601_s13, 4  ;;  %s605_s17 = int_to_ptr.hbm [resolvable:$true] %s604_s17 }
  0x12   : > { %s815_s29 = sshra.s32 (!%p232_p10), %s605_s17, 4  ;;  %s816_s29 = int_to_ptr.hbm [resolvable:$true] %s815_s29 }
  0x13   : > { %s817_s7 = scalar_lea.hbm (!%p232_p10), %s816_s29, 32  ;;  %p822_p1 = scmp.lt.s32.totalorder (!%p232_p10), %s816_s29, %s1076_s5 }
  0x14   : > { %v301_v0 = vld [vmem:[%s1073_s2 + $0x8] sm:$0xff]  ;;  %v300_v1 = vld [vmem:[%s1073_s2] sm:$0xff]  ;;  %s272_s11 = scalar_select %p271_p11, %s871_s21, 1  ;;  %v294_v6 = vld [vmem:[%s1072_s1 + $0x10] sm:$0xff]  ;;  %vm302_vm0 = vcmask 130048   ;;  %vm583_vm1 = vcmask 261120  }
  0x15   : > { %v329_v2 = vand.u32 4294901760, %v301_v0  ;;  %v331_v3 = vand.u32 4294901760, %v300_v1  ;;  %v295_v7 = vld [vmem:[%s1072_s1 + $0x18] sm:$0xff]  ;;  %v292_v10 = vld [vmem:[%s1072_s1] sm:$0xff]  ;;  %v293_v11 = vld [vmem:[%s1072_s1 + $0x8] sm:$0xff]  ;;  %p818_p12 = scmp.ne.s32.totalorder %s816_s29, %s817_s7 }
  0x16   : > { %s738_s12 = sshll.u32 %s272_s11, 5  ;;  %s821_s11 = scalar_lea.hbm %s1076_s5, 64 }
  0x17   : > { %740 = vmatpush.msra.mxu2 %v329_v2  ;;  %v381_v4 = vsub.f32 %v301_v0, %v329_v2  ;;  %v387_v5 = vsub.f32 %v300_v1, %v331_v3  ;;  %330 = vmatpush.msra.mxu0 %v329_v2  ;;  %s275_s25 = scalar_lea.vmem %s1071_s0, %s738_s12  ;;  %v567_v1 = vld [vmem:[%s1074_s3] sm:$0xff]  ;;  %s730_s12 = sshll.u32 %s268_s9, 5 }
  0x18   : > { %v290_v12 = vld [vmem:[%s275_s25 + $0x10] sm:$0xff]  ;;  %v291_v13 = vld [vmem:[%s275_s25 + $0x18] sm:$0xff]  ;;  %v288_v14 = vld [vmem:[%s275_s25] sm:$0xff]  ;;  %s1004_s15 = scalar_lea.vmem [#allocation2], %s730_s12  ;;  %p819_p13 = pnand %p818_p12, %p953_p4 }
  0x19   : > { %v382_v8 = vand.u32 4294901760, %v381_v4  ;;  %741 = vmatpush.msra.mxu2 %v331_v3  ;;  %v388_v9 = vand.u32 4294901760, %v387_v5  ;;  %332 = vmatpush.msra.mxu0 %v331_v3  ;;  %v298_v17 = vmul.f32 %v294_v6, %v290_v12  ;;  %v299_v18 = vmul.f32 %v295_v7, %v291_v13  ;;  %v289_v19 = vld [vmem:[%s275_s25 + $0x8] sm:$0xff]  ;;  %s602_s21 = sshll.u32 %s1004_s15, 4  ;;  %p823_p2 = scmp.lt.s32.totalorder %s821_s11, %s817_s7  ;;  %s603_s21 = int_to_ptr.vmem [resolvable:$true] %s602_s21 }
  0x1a   : > { %v296_v20 = vmul.f32 %v292_v10, %v288_v14  ;;  %v297_v21 = vmul.f32 %v293_v11, %v289_v19  ;;  %v568_v13 = vld [vmem:[%s1074_s3 + $0x8] sm:$0xff]  ;;  %p820_p0 = pneg %p819_p13 }
  0x1b   : > { %425 = vmatpush.msrb.mxu2 %v381_v4  ;;  %v383_v15 = vsub.f32 %v381_v4, %v382_v8  ;;  %v389_v16 = vsub.f32 %v387_v5, %v388_v9  ;;  %510 = vmatpush.msrb.mxu0 %v382_v8  ;;  %v310_v24 = vsel %vm302_vm0, %v298_v17, 0  ;;  %v313_v25 = vsel %vm302_vm0, %v299_v18, 0  ;;  %v576_v17 = vld [vmem:[%s1075_s4 + $0x8] sm:$0xff]  ;;  %p824_p3 = por %p823_p2, %p822_p1 }
  0x1c   : > { %v349_v26 = vand.u32 4294901760, %v310_v24  ;;  %v357_v27 = vand.u32 4294901760, %v313_v25  ;;  %v304_v28 = vsel %vm302_vm0, %v296_v20, 0  ;;  %v307_v29 = vsel %vm302_vm0, %v297_v21, 0 }
  0x1d   : > { %428 = vmatpush.msrb.mxu2 %v387_v5  ;;  %v384_v22 = vand.u32 4294901760, %v383_v15  ;;  %v390_v23 = vand.u32 4294901760, %v389_v16  ;;  %514 = vmatpush.msrb.mxu0 %v388_v9  ;;  %v333_v30 = vand.u32 4294901760, %v304_v28  ;;  %v341_v31 = vand.u32 4294901760, %v307_v29  ;;  %v575_v5 = vld [vmem:[%s1075_s4] sm:$0xff]  ;;  %p825_p5 = pnand %p824_p3, %p820_p0 }
  0x1e   : > { %v350_v32 = vsub.f32 %v310_v24, %v349_v26  ;;  %v358_v33 = vsub.f32 %v313_v25, %v357_v27 }
  0x1f   : > { %742 = vmatpush.msra.mxu3 %v384_v22  ;;  %385 = vmatpush.msra.mxu1 %v384_v22  ;;  %v334_v34 = vsub.f32 %v304_v28, %v333_v30  ;;  %v342_v35 = vsub.f32 %v307_v29, %v341_v31  ;;  %v577_v29 = vld [vmem:[%s1075_s4 + $0x10] sm:$0xff] }
  0x20   : > { %v351_v36 = vand.u32 4294901760, %v350_v32  ;;  %v359_v39 = vand.u32 4294901760, %v358_v33 }
  0x21   : > { %743 = vmatpush.msra.mxu3 %v390_v23  ;;  %391 = vmatpush.msra.mxu1 %v390_v23  ;;  %v335_v37 = vand.u32 4294901760, %v334_v34  ;;  %v343_v41 = vand.u32 4294901760, %v342_v35 }
  0x22   : > { %401 = vmatmul.f32.vlgmr.msra.gmra.mxu3 %v349_v26  ;;  %393 = vmatmul.f32.vlgmr.msra.gmra.mxu1 %v333_v30  ;;  %v352_v38 = vsub.f32 %v350_v32, %v351_v36  ;;  %v360_v44 = vsub.f32 %v358_v33, %v359_v39 }
  0x23   : > { %465 = vmatpush.msrb.mxu3 %v329_v2  ;;  %547 = vmatpush.msrb.mxu1 %v329_v2  ;;  %v336_v40 = vsub.f32 %v334_v34, %v335_v37  ;;  %v344_v45 = vsub.f32 %v342_v35, %v343_v41 }
  0x24   : > { %v353_v42 = vand.u32 4294901760, %v352_v38  ;;  %v361_v46 = vand.u32 4294901760, %v360_v44 }
  0x25   : > { %467 = vmatpush.msrb.mxu3 %v331_v3  ;;  %549 = vmatpush.msrb.mxu1 %v331_v3  ;;  %v337_v43 = vand.u32 4294901760, %v336_v40  ;;  %v345_v47 = vand.u32 4294901760, %v344_v45 }
  0x26   : > { %354 = vmatmul.f32.vlgmr.msra.gmra.mxu2 %v353_v42 }
  0x27   : > { %338 = vmatmul.f32.vlgmr.msra.gmra.mxu0 %v337_v43 }
  0x2a   : > { %405 = vmatmul.f32.gmra.mxu3 %v357_v27  ;;  %397 = vmatmul.f32.gmra.mxu1 %v341_v31 }
  0x2e   : > { %362 = vmatmul.f32.gmra.mxu2 %v361_v46 }
  0x2f   : > { %346 = vmatmul.f32.gmra.mxu0 %v345_v47 }
  0x32   : > { %471 = vmatmul.f32.vlgmr.msrb.gmra.mxu3 %v335_v37  ;;  %551 = vmatmul.f32.vlgmr.msrb.gmra.mxu1 %v333_v30 }
  0x36   : > { %431 = vmatmul.f32.vlgmr.msrb.gmra.mxu2 %v334_v34 }
  0x37   : > { %516 = vmatmul.f32.vlgmr.msrb.gmra.mxu0 %v333_v30 }
  0x3a   : > { %477 = vmatmul.f32.gmra.mxu3 %v343_v41  ;;  %555 = vmatmul.f32.gmra.mxu1 %v341_v31  ;;  %v578_v41 = vld [vmem:[%s1075_s4 + $0x18] sm:$0xff] }
  0x3e   : > { %436 = vmatmul.f32.gmra.mxu2 %v342_v35 }
  0x3f   : > { %520 = vmatmul.f32.gmra.mxu0 %v341_v31 }
  0x42   : > { %483 = vmatmul.f32.gmra.mxu3 %v351_v36  ;;  %559 = vmatmul.f32.gmra.mxu1 %v349_v26 }
  0x46   : > { %441 = vmatmul.f32.gmra.mxu2 %v350_v32 }
  0x47   : > { %524 = vmatmul.f32.gmra.mxu0 %v349_v26  ;;  %v569_v26 = vld [vmem:[%s1074_s3 + $0x10] sm:$0xff] }
  0x4a   : > { %489 = vmatmul.f32.gmra.mxu3 %v359_v39  ;;  %563 = vmatmul.f32.gmra.mxu1 %v357_v27  ;;  %v570_v39 = vld [vmem:[%s1074_s3 + $0x18] sm:$0xff] }
  0x4e   : > { %446 = vmatmul.f32.gmra.mxu2 %v358_v33 }
  0x4f   : > { %528 = vmatmul.f32.gmra.mxu0 %v357_v27 }
  0x9f   : > { %v394_v50 = vpop.f32.mrf.mxu1 }
  0xa4   : > { %v339_v49 = vpop.f32.mrf.mxu0 }
  0xa5   : > { %v402_v48 = vpop.f32.mrf.mxu3  ;;  %v395_v59 = vadd.f32 %v394_v50, %v339_v49 }
  0xa7   : > { %v398_v54 = vpop.f32.mrf.mxu1 }
  0xa9   : > { %v355_v51 = vpop.f32.mrf.mxu2 }
  0xaa   : > { %v403_v15 = vadd.f32 %v402_v48, %v355_v51 }
  0xac   : > { %v347_v53 = vpop.f32.mrf.mxu0 }
  0xad   : > { %v406_v52 = vpop.f32.mrf.mxu3  ;;  %v399_v3 = vadd.f32 %v398_v54, %v347_v53 }
  0xaf   : > { %v552_v58 = vpop.f32.mrf.mxu1 }
  0xb1   : > { %v363_v55 = vpop.f32.mrf.mxu2 }
  0xb2   : > { %v407_v27 = vadd.f32 %v406_v52, %v363_v55 }
  0xb4   : > { %v517_v57 = vpop.f32.mrf.mxu0 }
  0xb5   : > { %v472_v56 = vpop.f32.mrf.mxu3 }
  0xb7   : > { %v556_v7 = vpop.f32.mrf.mxu1 }
  0xb9   : > { %v432_v60 = vpop.f32.mrf.mxu2 }
  0xba   : > { %v433_v61 = vadd.f32 %v432_v60, %v395_v59 }
  0xbc   : > { %v473_v62 = vadd.f32 %v472_v56, %v433_v61  ;;  %v521_v2 = vpop.f32.mrf.mxu0 }
  0xbd   : > { %v478_v63 = vpop.f32.mrf.mxu3 }
  0xbe   : > { %v518_v0 = vadd.f32 %v517_v57, %v473_v62 }
  0xbf   : > { %v560_v22 = vpop.f32.mrf.mxu1 }
  0xc0   : > { %v553_v4 = vadd.f32 %v552_v58, %v518_v0 }
  0xc1   : > { %v437_v6 = vpop.f32.mrf.mxu2 }
  0xc2   : > { %v571_v8 = vmul.f32 %v567_v1, %v553_v4  ;;  %v438_v9 = vadd.f32 %v437_v6, %v399_v3 }
  0xc4   : > { %v579_v10 = vadd.f32 %v575_v5, %v571_v8  ;;  %v479_v11 = vadd.f32 %v478_v63, %v438_v9  ;;  %v525_v19 = vpop.f32.mrf.mxu0 }
  0xc5   : > { %v484_v14 = vpop.f32.mrf.mxu3 }
  0xc6   : > { %584 = vst.msk [vmem:[%s1004_s15] sm:$0xff] %vm583_vm1, %v579_v10  ;;  %v522_v12 = vadd.f32 %v521_v2, %v479_v11 }
  0xc7   : > { %v564_v37 = vpop.f32.mrf.mxu1 }
  0xc8   : > { %v557_v16 = vadd.f32 %v556_v7, %v522_v12 }
  0xc9   : > { %v442_v18 = vpop.f32.mrf.mxu2 }
  0xca   : > { %v572_v20 = vmul.f32 %v568_v13, %v557_v16  ;;  %v443_v21 = vadd.f32 %v442_v18, %v403_v15 }
  0xcc   : > { %v580_v23 = vadd.f32 %v576_v17, %v572_v20  ;;  %v485_v24 = vadd.f32 %v484_v14, %v443_v21  ;;  %v529_v34 = vpop.f32.mrf.mxu0 }
  0xcd   : > { %v490_v31 = vpop.f32.mrf.mxu3 }
  0xce   : > { %585 = vst.msk [vmem:[%s1004_s15 + $0x8] sm:$0xff] %vm583_vm1, %v580_v23  ;;  %v526_v25 = vadd.f32 %v525_v19, %v485_v24 }
  0xd0   : > { %v561_v28 = vadd.f32 %v560_v22, %v526_v25 }
  0xd1   : > { %v447_v30 = vpop.f32.mrf.mxu2 }
  0xd2   : > { %v573_v32 = vmul.f32 %v569_v26, %v561_v28  ;;  %v448_v33 = vadd.f32 %v447_v30, %v407_v27 }
  0xd4   : > { %v581_v35 = vadd.f32 %v577_v29, %v573_v32  ;;  %v491_v36 = vadd.f32 %v490_v31, %v448_v33 }
  0xd6   : > { %586 = vst.msk [vmem:[%s1004_s15 + $0x10] sm:$0xff] %vm583_vm1, %v581_v35  ;;  %v530_v38 = vadd.f32 %v529_v34, %v491_v36 }
  0xd8   : > { %v565_v40 = vadd.f32 %v564_v37, %v530_v38 }
  0xda   : > { %v574_v42 = vmul.f32 %v570_v39, %v565_v40 }
  0xdc   : > { %v582_v43 = vadd.f32 %v578_v41, %v574_v42 }
  0xde   : > { %587 = vst.msk [vmem:[%s1004_s15 + $0x18] sm:$0xff] %vm583_vm1, %v582_v43 }
  0xdf   : > { %828 = shalt.err (!%p825_p5)
}
  0xe0   : > { %s881_s9 = smov 128   ;;  %s882_s15 = smov 8  }
  0xe1   : > { %744 = dma.vmem_to_hbm [thread:$0]  (%p953_p4), %s603_s21, 512, %s605_s17, %s589_s27, %s881_s9, %s881_s9, %s882_s15  }
  0xe2 PF: > { %p750_p6 = scmp.ge.s32.totalorder %s879_s23, 2  ;;  %s619_s14 = sand.u32 1, %s859_s18  }
  0xe3   : > { %s620_s16 = scalar_lea.sflag [#allocation3], %s619_s14 }
  0xe4   : > { %p747_p7 = pnand %p750_p6, %p960_p8 }
  0xe6   : > { %p748_p9 = pneg %p747_p7 }
  0xe8   : > { %854 = dma.done.wait (%p748_p9), %s620_s16, 512  }
  0xe9   : > { %856 = vsyncadd (%p748_p9), %s620_s16, 4294966784  ;;  %s18_s23 = sadd.s32 1, %s879_s23   ;;  %s1079_s18 = smov %s863_s19 }
  0xea   : > { %p15_p10 = scmp.ge.s32.totalorder %s18_s23, 4   ;;  %s1080_s19 = smov %s867_s20 }
  0xeb   : > { %s1081_s20 = smov %s966_s6  ;;  %s1082_s21 = smov %s875_s22 }
  0xec   : > { %s1083_s22 = smov %s1085_s26  ;;  %17 = sbr.rel (!%p15_p10) target bundleno = 4 (0x4), region = 84 }
  0xf1   :  { %626 = vsyncpa [#allocation3], 1 }
  0xf2   :  { %628 = vsyncpa [#allocation3 + $0x1], 1 }

</bundles_post_ra>
